<compile_context>
chip_gen: v7x
topology: tpu7x:2x2x1
jax: 0.10.0
libtpu: 0.0.40
codegen_flags: <defaults>
</compile_context>

<pallas_src>
import functools
import math

import jax
import jax.numpy as jnp
from jax.experimental import pallas as pl
from jax.experimental.pallas import tpu as pltpu

_SQRT_HALF_PI = math.sqrt(math.pi / 2.0)


def _round_up(n, m):
    return ((n + m - 1) // m) * m


def _gelu(x):
    # Matches the PyTorch module exactly (sqrt(pi/2) constant, 0.044715 * x**3).
    return 0.5 * x * (1.0 + jnp.tanh(_SQRT_HALF_PI * (x + 0.044715 * x * x * x)))


def _chip_config():
    """Best-effort (vmem_capacity_bytes, likely_multi_tensorcore)."""
    vmem_cap = 128 * 1024 * 1024
    try:
        info = pltpu.get_tpu_info()
        vmem_cap = int(getattr(info, "vmem_capacity_bytes", vmem_cap))
    except Exception:
        pass
    # v7x: 64 MiB VMEM per TC and 2 TCs/chip; v5e/v6e: 128 MiB, 1 TC.
    multi_tc = vmem_cap <= 96 * 1024 * 1024
    return vmem_cap, multi_tc


def _pick_bf(d_ff_p, cap):
    for b in (512, 256, 128):
        if b <= cap and d_ff_p % b == 0:
            return b
    return 128


# --------------------------------------------------------------------------- #
# One-time parameter preparation (hoisted out of the per-call path).
# --------------------------------------------------------------------------- #
def prepare_feedforward_params(w1, b1, w2, b2, *, compute_dtype=jnp.bfloat16):
    """Pad + cast FFN weights ONCE at load time.

    w1: [d_model, d_ff], b1: [d_ff], w2: [d_ff, d_model], b2: [d_model].
    compute_dtype: MXU dtype for x/W1/W2/h (bf16 recommended on v5e/v6e/v7x, use
    None to keep f32).  Bias-add, gelu and accumulation always stay in f32.
    Zero padding is exact: gelu(0)=0, so padded d_ff columns contribute nothing and
    padded d_model columns of the output are sliced off by the caller.
    """
    d_model, d_ff = w1.shape
    d_model_p = _round_up(d_model, 128)
    d_ff_p = _round_up(d_ff, 128)
    cd = jnp.dtype(compute_dtype) if compute_dtype is not None else jnp.dtype(w1.dtype)
    w1p = jnp.pad(w1, ((0, d_model_p - d_model), (0, d_ff_p - d_ff))).astype(cd)
    w2p = jnp.pad(w2, ((0, d_ff_p - d_ff), (0, d_model_p - d_model))).astype(cd)
    b1p = jnp.pad(b1, (0, d_ff_p - d_ff)).reshape(1, d_ff_p).astype(jnp.float32)
    b2p = jnp.pad(b2, (0, d_model_p - d_model)).reshape(1, d_model_p).astype(jnp.float32)
    return dict(w1=w1p, b1=b1p, w2=w2p, b2=b2p,
                d_model=d_model, d_ff=d_ff,
                d_model_p=d_model_p, d_ff_p=d_ff_p,
                compute_dtype=cd)


# --------------------------------------------------------------------------- #
# Kernels
# --------------------------------------------------------------------------- #
def _ffn_resident_kernel(x_ref, w1_ref, b1_ref, w2_ref, b2_ref, o_ref, *,
                         bf, n_f, compute_dtype):
    """W1/W2 fully VMEM-resident; grid = (row_tiles,), d_ff reduced in-body."""
    x = x_ref[...].astype(compute_dtype)            # cast per tile (no wrapper HBM pass)
    tm, d_model_p = o_ref.shape

    def chunk(j, acc):
        off = j * bf
        if not isinstance(off, int):
            off = pl.multiple_of(off, bf)
        h = jnp.dot(x, w1_ref[:, pl.ds(off, bf)],
                    preferred_element_type=jnp.float32)
        h = _gelu(h + b1_ref[:, pl.ds(off, bf)])
        # TODO(synk): dropout is identity here (eval mode); training-mode dropout
        # would use pltpu.prng_seed + pltpu.prng_random_bits to build a mask.
        return acc + jnp.dot(h.astype(compute_dtype), w2_ref[pl.ds(off, bf), :],
                             preferred_element_type=jnp.float32)

    acc = jnp.zeros((tm, d_model_p), jnp.float32)
    if n_f <= 8:
        for j in range(n_f):                        # short, static -> fully unrolled
            acc = chunk(j, acc)
    else:
        acc = jax.lax.fori_loop(0, n_f, chunk, acc)

    o_ref[...] = (acc + b2_ref[...]).astype(o_ref.dtype)


def _ffn_stream_kernel_f32out(x_ref, w1_ref, b1_ref, w2_ref, b2_ref, o_ref, *,
                              compute_dtype):
    """Streams W1/W2 over grid axis 1; the f32 output block is the accumulator."""
    j = pl.program_id(1)
    x = x_ref[...].astype(compute_dtype)
    h = _gelu(jnp.dot(x, w1_ref[...], preferred_element_type=jnp.float32) + b1_ref[...])
    contrib = jnp.dot(h.astype(compute_dtype), w2_ref[...],
                      preferred_element_type=jnp.float32)

    @pl.when(j == 0)
    def _():
        o_ref[...] = contrib + b2_ref[...]

    @pl.when(j > 0)
    def _():
        o_ref[...] += contrib


def _ffn_stream_kernel_acc(x_ref, w1_ref, b1_ref, w2_ref, b2_ref, o_ref, acc_ref, *,
                           compute_dtype):
    """Streams W1/W2 over grid axis 1; f32 VMEM scratch accumulator (non-f32 output)."""
    j = pl.program_id(1)

    @pl.when(j == 0)
    def _():
        acc_ref[...] = jnp.zeros_like(acc_ref)

    x = x_ref[...].astype(compute_dtype)
    h = _gelu(jnp.dot(x, w1_ref[...], preferred_element_type=jnp.float32) + b1_ref[...])
    acc_ref[...] += jnp.dot(h.astype(compute_dtype), w2_ref[...],
                            preferred_element_type=jnp.float32)

    @pl.when(j == pl.num_programs(1) - 1)
    def _():
        o_ref[...] = (acc_ref[...] + b2_ref[...]).astype(o_ref.dtype)


# --------------------------------------------------------------------------- #
# Wrapper
# --------------------------------------------------------------------------- #
def feedforward(x, params, *, tm=None, vmem_limit_bytes=None, force_streaming=False):
    """x: [batch, seq, d_model] -> [batch, seq, d_model], using prepared params."""
    batch, seq, d_model = x.shape
    assert d_model == params["d_model"], "x last dim must match prepared d_model"
    d_model_p = params["d_model_p"]
    d_ff_p = params["d_ff_p"]
    cd = params["compute_dtype"]
    w1p, b1p, w2p, b2p = params["w1"], params["b1"], params["w2"], params["b2"]

    M = batch * seq
    out_dtype = x.dtype
    f32_out = jnp.dtype(out_dtype) == jnp.dtype(jnp.float32)

    vmem_cap, multi_tc = _chip_config()
    small_vmem = vmem_cap <= 96 * 1024 * 1024                  # v7x-like
    if vmem_limit_bytes is None:
        vmem_limit_bytes = min(int(vmem_cap * 0.75), 100 * 1024 * 1024)

    x_bytes = jnp.dtype(x.dtype).itemsize
    o_bytes = jnp.dtype(out_dtype).itemsize
    cd_bytes = jnp.dtype(cd).itemsize

    # ---- generation-aware row tile ------------------------------------------
    if tm is None:
        tm = 512
    tm = max(8, min(_round_up(tm, 8), _round_up(M, 8)))
    if multi_tc and M >= 16 and _round_up(M, tm) // tm < 2:
        tm = _round_up((M + 1) // 2, 8)                        # keep both v7x TCs busy

    weight_bytes = (w1p.size + w2p.size) * cd_bytes + (b1p.size + b2p.size) * 4
    bf_r = _pick_bf(d_ff_p, cap=256)                           # in-body d_ff chunk

    def resident_footprint(tm_):
        return (weight_bytes
                + 2 * tm_ * d_model_p * (x_bytes + o_bytes)    # double-buffered x / out
                + tm_ * d_model_p * 4                          # f32 accumulator
                + 2 * tm_ * bf_r * 4)                          # h intermediate headroom

    use_resident = (not force_streaming) and weight_bytes <= 0.55 * vmem_limit_bytes
    if use_resident:
        while resident_footprint(tm) > 0.85 * vmem_limit_bytes and tm > 128:
            tm = _round_up(tm // 2, 8)
        use_resident = resident_footprint(tm) <= 0.85 * vmem_limit_bytes

    bf_s = _pick_bf(d_ff_p, cap=256 if small_vmem else 512)    # streaming d_ff block
    if not use_resident:
        def stream_footprint(tm_, bf_):
            return (2 * tm_ * d_model_p * (x_bytes + o_bytes)  # x / out tiles
                    + 2 * d_model_p * bf_ * cd_bytes * 2       # W1 + W2 blocks (dbuf)
                    + tm_ * d_model_p * 4                      # f32 accumulator
                    + tm_ * bf_ * 4)                           # h intermediate
        while (stream_footprint(tm, bf_s) > 0.85 * vmem_limit_bytes
               and (tm > 128 or bf_s > 128)):
            if tm > 128:
                tm = _round_up(tm // 2, 8)
            else:
                bf_s = max(128, bf_s // 2)

    M_p = _round_up(M, tm)
    n_m = M_p // tm

    # ---- pad rows / d_model only when needed; keep native dtype (cast in-kernel)
    x2d = x.reshape(M, d_model)
    if M_p != M or d_model_p != d_model:
        x2d = jnp.pad(x2d, ((0, M_p - M), (0, d_model_p - d_model)))

    weight_stream_factor = 1 if use_resident else n_m
    cost = pl.CostEstimate(
        flops=int(4 * M_p * d_model_p * d_ff_p),               # two matmuls
        transcendentals=int(M_p * d_ff_p),                     # tanh in gelu
        bytes_accessed=int(M_p * d_model_p * (x_bytes + o_bytes)
                           + weight_stream_factor * (w1p.size + w2p.size) * cd_bytes
                           + (b1p.size + b2p.size) * 4),
    )

    if use_resident:
        kernel = functools.partial(_ffn_resident_kernel,
                                   bf=bf_r, n_f=d_ff_p // bf_r, compute_dtype=cd)
        grid_spec = pltpu.PrefetchScalarGridSpec(
            num_scalar_prefetch=0,
            grid=(n_m,),
            in_specs=[
                pl.BlockSpec((tm, d_model_p), lambda i: (i, 0)),        # x rows
                pl.BlockSpec(memory_space=pltpu.MemorySpace.VMEM),      # W1 (resident)
                pl.BlockSpec(memory_space=pltpu.MemorySpace.VMEM),      # b1
                pl.BlockSpec(memory_space=pltpu.MemorySpace.VMEM),      # W2 (resident)
                pl.BlockSpec(memory_space=pltpu.MemorySpace.VMEM),      # b2
            ],
            out_specs=pl.BlockSpec((tm, d_model_p), lambda i: (i, 0)),
        )
        dim_sem = ("parallel",)
    else:
        n_f = d_ff_p // bf_s
        if f32_out:
            kernel = functools.partial(_ffn_stream_kernel_f32out, compute_dtype=cd)
            scratch = []
        else:
            kernel = functools.partial(_ffn_stream_kernel_acc, compute_dtype=cd)
            scratch = [pltpu.VMEM((tm, d_model_p), jnp.float32)]
        grid_spec = pltpu.PrefetchScalarGridSpec(
            num_scalar_prefetch=0,
            grid=(n_m, n_f),                                   # d_ff reduction axis last
            in_specs=[
                pl.BlockSpec((tm, d_model_p), lambda i, j: (i, 0)),     # x rows
                pl.BlockSpec((d_model_p, bf_s), lambda i, j: (0, j)),   # W1 block
                pl.BlockSpec((1, bf_s), lambda i, j: (0, j)),           # b1 block
                pl.BlockSpec((bf_s, d_model_p), lambda i, j: (j, 0)),   # W2 block
                pl.BlockSpec((1, d_model_p), lambda i, j: (0, 0)),      # b2 (constant)
            ],
            out_specs=pl.BlockSpec((tm, d_model_p), lambda i, j: (i, 0)),
            scratch_shapes=scratch,
        )
        dim_sem = ("parallel", "arbitrary")

    out2d = pl.pallas_call(
        kernel,
        out_shape=jax.ShapeDtypeStruct((M_p, d_model_p), out_dtype),
        grid_spec=grid_spec,
        compiler_params=pltpu.CompilerParams(
            dimension_semantics=dim_sem,
            vmem_limit_bytes=int(vmem_limit_bytes),
        ),
        cost_estimate=cost,
    )(x2d, w1p, b1p, w2p, b2p)

    return out2d[:M, :d_model].reshape(batch, seq, d_model)


def feedforward_ref(x, w1, b1, w2, b2):
    h = _gelu(jnp.einsum("bsd,df->bsf", x, w1) + b1)
    return jnp.einsum("bsf,fd->bsd", h, w2) + b2


if __name__ == "__main__":
    # Small shapes consistent with the module: batch=2, seq=8, d_model=32, d_ff=64.
    batch, seq, d_model, d_ff = 2, 8, 32, 64

    key = jax.random.PRNGKey(0)
    kx, kw1, kb1, kw2, kb2 = jax.random.split(key, 5)

    x = jax.random.normal(kx, (batch, seq, d_model), dtype=jnp.float32)
    lim1 = 1.0 / math.sqrt(d_model)
    lim2 = 1.0 / math.sqrt(d_ff)
    w1 = jax.random.uniform(kw1, (d_model, d_ff), jnp.float32, -lim1, lim1)
    b1 = jax.random.uniform(kb1, (d_ff,), jnp.float32, -lim1, lim1)
    w2 = jax.random.uniform(kw2, (d_ff, d_model), jnp.float32, -lim2, lim2)
    b2 = jax.random.uniform(kb2, (d_model,), jnp.float32, -lim2, lim2)

    ref = feedforward_ref(x, w1, b1, w2, b2)

    # 1) f32 compute, weight-resident fast path (exact check).
    params_f32 = prepare_feedforward_params(w1, b1, w2, b2, compute_dtype=None)
    out = jax.block_until_ready(feedforward(x, params_f32))
    assert out.shape == (batch, seq, d_model)
    assert jnp.allclose(out, ref, atol=1e-5, rtol=1e-5)

    # 2) f32 compute, streaming path (accumulates directly into the f32 output block).
    out_s = jax.block_until_ready(feedforward(x, params_f32, force_streaming=True, tm=8))
    assert jnp.allclose(out_s, ref, atol=1e-5, rtol=1e-5)

    # 3) bf16 MXU path (weights prepared once in bf16), weight-resident.
    params_bf16 = prepare_feedforward_params(w1, b1, w2, b2, compute_dtype=jnp.bfloat16)
    out_bf16 = jax.block_until_ready(feedforward(x, params_bf16))
    assert out_bf16.shape == (batch, seq, d_model)
    assert bool(jnp.isfinite(out_bf16).all())
    assert float(jnp.max(jnp.abs(out_bf16 - ref))) < 0.25

    # 4) bf16 input/output, streaming path with the f32 scratch accumulator.
    out_bb = jax.block_until_ready(
        feedforward(x.astype(jnp.bfloat16), params_bf16, force_streaming=True, tm=8))
    assert out_bb.dtype == jnp.bfloat16
    assert float(jnp.max(jnp.abs(out_bb.astype(jnp.float32) - ref))) < 0.25

    print("KERNEL_OK")
</pallas_src>

<mosaic_0001>
module attributes {stable_mosaic.version = 11 : i64} {
  func.func @_ffn_resident_kernel(%arg0: i32, %arg1: memref<16x128xf32, #tpu.memory_space<vmem>>, %arg2: memref<128x128xf32, #tpu.memory_space<vmem>>, %arg3: memref<1x128xf32, #tpu.memory_space<vmem>>, %arg4: memref<128x128xf32, #tpu.memory_space<vmem>>, %arg5: memref<1x128xf32, #tpu.memory_space<vmem>>, %arg6: memref<16x128xf32, #tpu.memory_space<vmem>>) attributes {dimension_semantics = [#tpu.dimension_semantics<parallel>], iteration_bounds = array<i64: 1>, scalar_prefetch = 0 : i64, scratch_operands = 0 : i64, tpu.core_type = #tpu.core_type<tc>, window_params = [{transform_indices = @transform_0, window_bounds = array<i64: 16, 128>}, {pipeline_mode = #tpu.pipeline_mode<synchronous>, transform_indices = @transform_1, window_bounds = array<i64: 128, 128>}, {pipeline_mode = #tpu.pipeline_mode<synchronous>, transform_indices = @transform_2, window_bounds = array<i64: 1, 128>}, {pipeline_mode = #tpu.pipeline_mode<synchronous>, transform_indices = @transform_3, window_bounds = array<i64: 128, 128>}, {pipeline_mode = #tpu.pipeline_mode<synchronous>, transform_indices = @transform_4, window_bounds = array<i64: 1, 128>}, {transform_indices = @transform_5, window_bounds = array<i64: 16, 128>}]} {
    %c0 = arith.constant 0 : index
    %c0_0 = arith.constant 0 : index
    %0 = vector.load %arg1[%c0, %c0_0] : memref<16x128xf32, #tpu.memory_space<vmem>>, vector<16x128xf32>
    %cst = arith.constant 0.000000e+00 : f32
    %1 = vector.broadcast %cst : f32 to vector<16x128xf32>
    %c0_1 = arith.constant 0 : index
    %c0_2 = arith.constant 0 : index
    %2 = vector.load %arg2[%c0_1, %c0_2] : memref<128x128xf32, #tpu.memory_space<vmem>>, vector<128x128xf32>
    %cst_3 = arith.constant dense<0.000000e+00> : vector<16x128xf32>
    %3 = tpu.matmul %0, %2, %cst_3 {dimension_numbers = #tpu.dot_dimension_numbers<[1], [0], [0], [1], [0, 0, 1, 1], [], []>} : vector<16x128xf32>, vector<128x128xf32>, vector<16x128xf32> -> vector<16x128xf32>
    %c0_4 = arith.constant 0 : index
    %c0_5 = arith.constant 0 : index
    %4 = vector.load %arg3[%c0_4, %c0_5] : memref<1x128xf32, #tpu.memory_space<vmem>>, vector<1x128xf32>
    %5 = vector.broadcast %4 : vector<1x128xf32> to vector<16x128xf32>
    %6 = arith.addf %3, %5 : vector<16x128xf32>
    %cst_6 = arith.constant 5.000000e-01 : f32
    %7 = vector.broadcast %cst_6 : f32 to vector<16x128xf32>
    %8 = arith.mulf %7, %6 : vector<16x128xf32>
    %cst_7 = arith.constant 4.471500e-02 : f32
    %9 = vector.broadcast %cst_7 : f32 to vector<16x128xf32>
    %10 = arith.mulf %9, %6 : vector<16x128xf32>
    %11 = arith.mulf %10, %6 : vector<16x128xf32>
    %12 = arith.mulf %11, %6 : vector<16x128xf32>
    %13 = arith.addf %6, %12 : vector<16x128xf32>
    %cst_8 = arith.constant 1.25331414 : f32
    %14 = vector.broadcast %cst_8 : f32 to vector<16x128xf32>
    %15 = arith.mulf %14, %13 : vector<16x128xf32>
    %16 = math.tanh %15 : vector<16x128xf32>
    %cst_9 = arith.constant 1.000000e+00 : f32
    %17 = vector.broadcast %cst_9 : f32 to vector<16x128xf32>
    %18 = arith.addf %17, %16 : vector<16x128xf32>
    %19 = arith.mulf %8, %18 : vector<16x128xf32>
    %c0_10 = arith.constant 0 : index
    %c0_11 = arith.constant 0 : index
    %20 = vector.load %arg4[%c0_10, %c0_11] : memref<128x128xf32, #tpu.memory_space<vmem>>, vector<128x128xf32>
    %cst_12 = arith.constant dense<0.000000e+00> : vector<16x128xf32>
    %21 = tpu.matmul %19, %20, %cst_12 {dimension_numbers = #tpu.dot_dimension_numbers<[1], [0], [0], [1], [0, 0, 1, 1], [], []>} : vector<16x128xf32>, vector<128x128xf32>, vector<16x128xf32> -> vector<16x128xf32>
    %22 = arith.addf %1, %21 : vector<16x128xf32>
    %c0_13 = arith.constant 0 : index
    %c0_14 = arith.constant 0 : index
    %23 = vector.load %arg5[%c0_13, %c0_14] : memref<1x128xf32, #tpu.memory_space<vmem>>, vector<1x128xf32>
    %24 = vector.broadcast %23 : vector<1x128xf32> to vector<16x128xf32>
    %25 = arith.addf %22, %24 : vector<16x128xf32>
    %c0_15 = arith.constant 0 : index
    %c0_16 = arith.constant 0 : index
    %26 = vector.load %arg6[%c0_15, %c0_16] : memref<16x128xf32, #tpu.memory_space<vmem>>, vector<16x128xf32>
    tpu.vector_store %arg6[%c0_15, %c0_16], %25 {strides = array<i32>} : memref<16x128xf32, #tpu.memory_space<vmem>>, vector<16x128xf32>,
    return
  }
  func.func @transform_0(%arg0: i32) -> (i32, i32) {
    %c0_i32 = arith.constant 0 : i32
    %c0_i32_0 = arith.constant 0 : i32
    return %arg0, %c0_i32 : i32, i32
  }
  func.func @transform_1(%arg0: i32) -> (i32, i32) {
    %c0_i32 = arith.constant 0 : i32
    %c0_i32_0 = arith.constant 0 : i32
    %c0_i32_1 = arith.constant 0 : i32
    return %c0_i32, %c0_i32_0 : i32, i32
  }
  func.func @transform_2(%arg0: i32) -> (i32, i32) {
    %c0_i32 = arith.constant 0 : i32
    %c0_i32_0 = arith.constant 0 : i32
    %c0_i32_1 = arith.constant 0 : i32
    return %c0_i32, %c0_i32_0 : i32, i32
  }
  func.func @transform_3(%arg0: i32) -> (i32, i32) {
    %c0_i32 = arith.constant 0 : i32
    %c0_i32_0 = arith.constant 0 : i32
    %c0_i32_1 = arith.constant 0 : i32
    return %c0_i32, %c0_i32_0 : i32, i32
  }
  func.func @transform_4(%arg0: i32) -> (i32, i32) {
    %c0_i32 = arith.constant 0 : i32
    %c0_i32_0 = arith.constant 0 : i32
    %c0_i32_1 = arith.constant 0 : i32
    return %c0_i32, %c0_i32_0 : i32, i32
  }
  func.func @transform_5(%arg0: i32) -> (i32, i32) {
    %c0_i32 = arith.constant 0 : i32
    %c0_i32_0 = arith.constant 0 : i32
    return %arg0, %c0_i32 : i32, i32
  }
}

</mosaic_0001>

<bundles_post_ra>
// kernel: tpu_custom_call.1
= control target key start
LH: loop header
LB: loop body
LE: loop exit
PB: predicated region body
PF: predicated region fallthrough
CT: control target
= control target key end

     0   :  { %10 = vsyncpa [#allocation3], 0  ;;  %s775_s0 = inlined_call_operand.hbm [shape: f32[16,128], index: 0, kind: input, shape index: {}]   ;;  %s776_s1 = inlined_call_operand.hbm [shape: f32[128,128], index: 1, kind: input, shape index: {}]   ;;  %s777_s2 = inlined_call_operand.hbm [shape: f32[1,128], index: 2, kind: input, shape index: {}]   ;;  %s778_s3 = inlined_call_operand.hbm [shape: f32[128,128], index: 3, kind: input, shape index: {}]   ;;  %s779_s4 = inlined_call_operand.hbm [shape: f32[1,128], index: 4, kind: input, shape index: {}]   ;;  %s780_s5 = inlined_call_operand.hbm [shape: f32[16,128], index: 5, kind: output, shape index: {}]  }
   0x1   :  { %11 = vsyncpa [#allocation6], 0 }
   0x2   :  { %12 = vsyncpa [#allocation9], 0 }
   0x3   :  { %13 = vsyncpa [#allocation4], 0  ;;  %s646_s18 = smov [#allocation5]   ;;  %s647_s20 = smov [#allocation8]  }
   0x4   :  { %s31_s19 = sshll.u32 %s646_s18, 4  ;;  %s53_s21 = sshll.u32 %s647_s20, 4  ;;  %s32_s19 = int_to_ptr.vmem [resolvable:$true] %s31_s19  ;;  %s684_s21 = int_to_ptr.vmem [resolvable:$true] %s53_s21 }
   0x5   :  { %s506_s24 = scalar_lea.hbm %s776_s1, 2048 }
   0x6   :  { %p507_p0 = scmp.ne.s32.totalorder %s776_s1, %s506_s24  ;;  %p510_p1 = scmp.lt.u32.totalorder %s506_s24, %s776_s1 }
   0x8   :  { %p512_p2 = pnand %p510_p1, %p507_p0 }
   0xa   :  { %515 = shalt.err (!%p512_p2)
}
   0xb   :  { %s516_s29 = scalar_lea.vmem %s32_s19, 2048  ;;  %p521_p4 = scmp.lt.s32.totalorder %s32_s19, %s32_s19 }
   0xc   :  { %p517_p3 = scmp.ne.s32.totalorder %s32_s19, %s516_s29  ;;  %p522_p5 = scmp.lt.s32.totalorder %s516_s29, %s516_s29 }
   0xe   :  { %p523_p6 = por %p522_p5, %p521_p4 }
  0x10   :  { %p524_p7 = pnand %p523_p6, %p517_p3 }
  0x12   :  { %527 = shalt.err (!%p524_p7)
}
  0x13   :  { %s648_s30 = smov 128   ;;  %s649_s6 = smov 8  }
  0x14   :  { %37 = dma.hbm_to_vmem [thread:$0]  %s776_s1, 2048, %s32_s19, [#allocation6], %s648_s30, %s648_s30, %s649_s6  }
  0x15   :  { %s528_s11 = scalar_lea.hbm %s778_s3, 2048 }
  0x16   :  { %p529_p8 = scmp.ne.s32.totalorder %s778_s3, %s528_s11  ;;  %p532_p9 = scmp.lt.u32.totalorder %s528_s11, %s778_s3 }
  0x18   :  { %p534_p10 = pnand %p532_p9, %p529_p8 }
  0x1a   :  { %537 = shalt.err (!%p534_p10)
}
  0x1b   :  { %s538_s16 = scalar_lea.vmem %s684_s21, 2048  ;;  %p543_p12 = scmp.lt.s32.totalorder %s684_s21, %s684_s21 }
  0x1c   :  { %p539_p11 = scmp.ne.s32.totalorder %s684_s21, %s538_s16  ;;  %p544_p13 = scmp.lt.s32.totalorder %s538_s16, %s538_s16 }
  0x1e   :  { %p545_p0 = por %p544_p13, %p543_p12 }
  0x20   :  { %p546_p1 = pnand %p545_p0, %p539_p11 }
  0x22   :  { %549 = shalt.err (!%p546_p1)
}
  0x23   :  { %59 = dma.hbm_to_vmem [thread:$0]  %s778_s3, 2048, %s684_s21, [#allocation9], %s648_s30, %s648_s30, %s649_s6  }
  0x24   :  { %s650_s18 = smov [#allocation2]   ;;  %s651_s20 = smov [#allocation7]  }
  0x25   :  { %s19_s19 = sshll.u32 %s650_s18, 4  ;;  %s44_s22 = sshll.u32 %s651_s20, 4  ;;  %s20_s19 = int_to_ptr.vmem [resolvable:$true] %s19_s19  ;;  %s45_s22 = int_to_ptr.vmem [resolvable:$true] %s44_s22 }
  0x26   :  { %s550_s25 = scalar_lea.hbm %s775_s0, 256 }
  0x27   :  { %p551_p2 = scmp.ne.s32.totalorder %s775_s0, %s550_s25  ;;  %p554_p3 = scmp.lt.u32.totalorder %s550_s25, %s775_s0 }
  0x29   :  { %p556_p4 = pnand %p554_p3, %p551_p2 }
  0x2b   :  { %559 = shalt.err (!%p556_p4)
}
  0x2c   :  { %s560_s3 = scalar_lea.vmem %s20_s19, 256  ;;  %p565_p6 = scmp.lt.s32.totalorder %s20_s19, %s20_s19 }
  0x2d   :  { %p561_p5 = scmp.ne.s32.totalorder %s20_s19, %s560_s3  ;;  %p566_p7 = scmp.lt.s32.totalorder %s560_s3, %s560_s3 }
  0x2f   :  { %p567_p8 = por %p566_p7, %p565_p6 }
  0x31   :  { %p568_p9 = pnand %p567_p8, %p561_p5 }
  0x33   :  { %571 = shalt.err (!%p568_p9)
}
  0x34   :  { %25 = dma.hbm_to_vmem [thread:$0]  %s775_s0, 256, %s20_s19, [#allocation3], %s648_s30, %s648_s30, %s649_s6  }
  0x35   :  { %s572_s10 = scalar_lea.hbm %s777_s2, 16 }
  0x36   :  { %p573_p10 = scmp.ne.s32.totalorder %s777_s2, %s572_s10  ;;  %p576_p11 = scmp.lt.u32.totalorder %s572_s10, %s777_s2 }
  0x38   :  { %p578_p12 = pnand %p576_p11, %p573_p10 }
  0x3a   :  { %581 = shalt.err (!%p578_p12)
}
  0x3b   :  { %s582_s15 = scalar_lea.vmem %s45_s22, 16  ;;  %s586_s16 = scalar_lea.vmem %s45_s22, 32 }
  0x3c   :  { %p583_p13 = scmp.ne.s32.totalorder %s45_s22, %s582_s15  ;;  %p587_p0 = scmp.lt.s32.totalorder %s45_s22, %s45_s22 }
  0x3d   :  { %p588_p1 = scmp.lt.s32.totalorder %s586_s16, %s582_s15 }
  0x3f   :  { %p589_p2 = por %p588_p1, %p587_p0 }
  0x41   :  { %p590_p3 = pnand %p589_p2, %p583_p13 }
  0x43   :  { %593 = shalt.err (!%p590_p3)
}
  0x44   :  { %47 = dma.hbm_to_vmem [thread:$0]  %s777_s2, 16, %s45_s22, [#allocation6]  }
  0x45   :  { %s652_s17 = smov [#allocation10]   ;;  %s594_s23 = scalar_lea.hbm %s779_s4, 16 }
  0x46   :  { %s66_s18 = sshll.u32 %s652_s17, 4  ;;  %p595_p4 = scmp.ne.s32.totalorder %s779_s4, %s594_s23  ;;  %s67_s18 = int_to_ptr.vmem [resolvable:$true] %s66_s18 }
  0x47   :  { %p598_p5 = scmp.lt.u32.totalorder %s594_s23, %s779_s4 }
  0x49   :  { %p600_p6 = pnand %p598_p5, %p595_p4 }
  0x4b   :  { %603 = shalt.err (!%p600_p6)
}
  0x4c   :  { %s604_s28 = scalar_lea.vmem %s67_s18, 16  ;;  %s608_s2 = scalar_lea.vmem %s67_s18, 32 }
  0x4d   :  { %p605_p7 = scmp.ne.s32.totalorder %s67_s18, %s604_s28  ;;  %p609_p8 = scmp.lt.s32.totalorder %s67_s18, %s67_s18 }
  0x4e   :  { %p610_p9 = scmp.lt.s32.totalorder %s608_s2, %s604_s28 }
  0x50   :  { %p611_p10 = por %p610_p9, %p609_p8 }
  0x52   :  { %p612_p11 = pnand %p611_p10, %p605_p7 }
  0x54   :  { %615 = shalt.err (!%p612_p11)
}
  0x55   :  { %69 = dma.hbm_to_vmem [thread:$0]  %s779_s4, 16, %s67_s18, [#allocation9]  }
  0x56   :  { %638 = dma.done.wait [#allocation3], 256  }
  0x57   :  { %639 = vsyncadd [#allocation3], 4294967040 }
  0x58   :  { %640 = dma.done.wait [#allocation6], 2064  }
  0x59   :  { %641 = vsyncadd [#allocation6], 4294965232 }
  0x5a   :  { %642 = dma.done.wait [#allocation9], 2064  }
  0x5b   :  { %643 = vsyncadd [#allocation9], 4294965232  ;;  %v87_v0 = vld [vmem:[#allocation5] sm:$0xff]  ;;  %v88_v1 = vld [vmem:[#allocation5 + $0x8] sm:$0xff]  ;;  %s653_s4 = smov [#allocation11]  }
  0x5c   :  { %v89_v2 = vld [vmem:[#allocation5 + $0x10] sm:$0xff]  ;;  %v430_v3 = vpack.c.bf16 %v88_v1, %v87_v0  ;;  %v90_v4 = vld [vmem:[#allocation5 + $0x18] sm:$0xff]  ;;  %v91_v6 = vld [vmem:[#allocation5 + $0x20] sm:$0xff]  ;;  %s308_s3 = sshll.u32 %s653_s4, 4  ;;  %s309_s3 = int_to_ptr.vmem [resolvable:$true] %s308_s3 }
  0x5d   :  { %v434_v5 = vpack.c.bf16 %v90_v4, %v89_v2  ;;  %v92_v7 = vld [vmem:[#allocation5 + $0x28] sm:$0xff]  ;;  %v93_v9 = vld [vmem:[#allocation5 + $0x30] sm:$0xff]  ;;  %v94_v11 = vld [vmem:[#allocation5 + $0x38] sm:$0xff]  ;;  %s616_s21 = scalar_lea.vmem %s309_s3, 256  ;;  %p621_p13 = scmp.lt.s32.totalorder %s309_s3, %s309_s3 }
  0x5e   :  { %431 = vmatprep.subr.bf16.mxu0 %v430_v3  ;;  %v438_v8 = vpack.c.bf16 %v92_v7, %v91_v6  ;;  %v85_v10 = vld [vmem:[#allocation2] sm:$0xff]  ;;  %v203_v12 = vld [vmem:[#allocation8] sm:$0xff]  ;;  %v442_v15 = vpack.c.bf16 %v94_v11, %v93_v9  ;;  %v98_v20 = vld [vmem:[#allocation5 + $0x58] sm:$0xff]  ;;  %p617_p12 = scmp.ne.s32.totalorder %s309_s3, %s616_s21  ;;  %p622_p0 = scmp.lt.s32.totalorder %s616_s21, %s616_s21 }
  0x5f   :  { %433 = vmatpush3.bf16.msra.mxu0 %v430_v3  ;;  %392 = vmatprep.mubr.f32.mxu0 %v85_v10  ;;  %v204_v13 = vld [vmem:[#allocation8 + $0x8] sm:$0xff]  ;;  %v95_v16 = vld [vmem:[#allocation5 + $0x40] sm:$0xff]  ;;  %v102_v26 = vld [vmem:[#allocation5 + $0x78] sm:$0xff] }
  0x60   :  { %435 = vmatprep.subr.bf16.mxu0 %v434_v5  ;;  %v462_v14 = vpack.c.bf16 %v204_v13, %v203_v12  ;;  %v96_v17 = vld [vmem:[#allocation5 + $0x48] sm:$0xff]  ;;  %v97_v19 = vld [vmem:[#allocation5 + $0x50] sm:$0xff]  ;;  %v99_v22 = vld [vmem:[#allocation5 + $0x60] sm:$0xff]  ;;  %p623_p1 = por %p622_p0, %p621_p13 }
  0x61   :  { %v446_v18 = vpack.c.bf16 %v96_v17, %v95_v16  ;;  %v450_v21 = vpack.c.bf16 %v98_v20, %v97_v19  ;;  %v100_v23 = vld [vmem:[#allocation5 + $0x68] sm:$0xff]  ;;  %v101_v25 = vld [vmem:[#allocation5 + $0x70] sm:$0xff]  ;;  %v86_v28 = vld [vmem:[#allocation2 + $0x8] sm:$0xff] }
  0x62   :  { %463 = vmatprep.subr.bf16.mxu1 %v462_v14  ;;  %v454_v24 = vpack.c.bf16 %v100_v23, %v99_v22  ;;  %v458_v27 = vpack.c.bf16 %v102_v26, %v101_v25  ;;  %v205_v29 = vld [vmem:[#allocation8 + $0x10] sm:$0xff]  ;;  %v206_v30 = vld [vmem:[#allocation8 + $0x18] sm:$0xff]  ;;  %v207_v32 = vld [vmem:[#allocation8 + $0x20] sm:$0xff]  ;;  %p624_p2 = pnand %p623_p1, %p617_p12 }
  0x63   :  { %437 = vmatpush3.bf16.msra.mxu0 %v434_v5  ;;  %465 = vmatpush3.bf16.msra.mxu1 %v462_v14  ;;  %v466_v31 = vpack.c.bf16 %v206_v30, %v205_v29  ;;  %v208_v33 = vld [vmem:[#allocation8 + $0x28] sm:$0xff]  ;;  %v209_v35 = vld [vmem:[#allocation8 + $0x30] sm:$0xff]  ;;  %v210_v36 = vld [vmem:[#allocation8 + $0x38] sm:$0xff] }
  0x64   :  { %439 = vmatprep.subr.bf16.mxu0 %v438_v8  ;;  %v470_v34 = vpack.c.bf16 %v208_v33, %v207_v32  ;;  %v211_v37 = vld [vmem:[#allocation8 + $0x40] sm:$0xff]  ;;  %v474_v38 = vpack.c.bf16 %v210_v36, %v209_v35  ;;  %v212_v39 = vld [vmem:[#allocation8 + $0x48] sm:$0xff]  ;;  %v213_v41 = vld [vmem:[#allocation8 + $0x50] sm:$0xff] }
  0x65   :  { %467 = vmatprep.subr.bf16.mxu1 %v466_v31  ;;  %v478_v40 = vpack.c.bf16 %v212_v39, %v211_v37  ;;  %v214_v42 = vld [vmem:[#allocation8 + $0x58] sm:$0xff]  ;;  %v215_v44 = vld [vmem:[#allocation8 + $0x60] sm:$0xff]  ;;  %v216_v45 = vld [vmem:[#allocation8 + $0x68] sm:$0xff] }
  0x66   :  { %v482_v43 = vpack.c.bf16 %v214_v42, %v213_v41  ;;  %v486_v46 = vpack.c.bf16 %v216_v45, %v215_v44  ;;  %v217_v47 = vld [vmem:[#allocation8 + $0x70] sm:$0xff]  ;;  %v218_v48 = vld [vmem:[#allocation8 + $0x78] sm:$0xff]  ;;  %v323_v9 = vld [vmem:[#allocation10] ss:$0 sm:$0xff] }
  0x67   :  { %441 = vmatpush3.bf16.msra.mxu0 %v438_v8  ;;  %469 = vmatpush3.bf16.msra.mxu1 %v466_v31  ;;  %v490_v49 = vpack.c.bf16 %v218_v48, %v217_v47  ;;  %v322_v50 = vld [vmem:[#allocation7] ss:$0 sm:$0xff] }
  0x68   :  { %443 = vmatprep.subr.bf16.mxu0 %v442_v15  ;;  %471 = vmatprep.subr.bf16.mxu1 %v470_v34 }
  0x6b   :  { %445 = vmatpush3.bf16.msra.mxu0 %v442_v15  ;;  %473 = vmatpush3.bf16.msra.mxu1 %v470_v34 }
  0x6c   :  { %447 = vmatprep.subr.bf16.mxu0 %v446_v18  ;;  %475 = vmatprep.subr.bf16.mxu1 %v474_v38 }
  0x6f   :  { %449 = vmatpush3.bf16.msra.mxu0 %v446_v18  ;;  %477 = vmatpush3.bf16.msra.mxu1 %v474_v38 }
  0x70   :  { %451 = vmatprep.subr.bf16.mxu0 %v450_v21  ;;  %479 = vmatprep.subr.bf16.mxu1 %v478_v40 }
  0x73   :  { %453 = vmatpush3.bf16.msra.mxu0 %v450_v21  ;;  %481 = vmatpush3.bf16.msra.mxu1 %v478_v40 }
  0x74   :  { %455 = vmatprep.subr.bf16.mxu0 %v454_v24  ;;  %483 = vmatprep.subr.bf16.mxu1 %v482_v43 }
  0x77   :  { %457 = vmatpush3.bf16.msra.mxu0 %v454_v24  ;;  %485 = vmatpush3.bf16.msra.mxu1 %v482_v43 }
  0x78   :  { %459 = vmatprep.subr.bf16.mxu0 %v458_v27  ;;  %487 = vmatprep.subr.bf16.mxu1 %v486_v46 }
  0x7b   :  { %461 = vmatpush3.bf16.msra.mxu0 %v458_v27  ;;  %489 = vmatpush3.bf16.msra.mxu1 %v486_v46 }
  0x7c   :  { %491 = vmatprep.subr.bf16.mxu1 %v490_v49 }
  0x7e   :  { %393 = vmatmul.mubr.f32.vlgmr.msra.gmra.mrb[0].mxu0 %v86_v28 }
  0x7f   :  { %493 = vmatpush3.bf16.msra.mxu1 %v490_v49 }
 0x151   :  { %v394_v51 = vpop.f32.mrb[0].mxu0 }
 0x152   :  { %v182_v52 = vadd.f32 %v394_v51, %v322_v50  ;;  %v176_v53 = vpop.f32.mrb[1].mxu0 }
 0x153   :  { %v177_v54 = vadd.f32 %v322_v50, %v176_v53 }
 0x154   :  { %v188_v55 = vmul.f32 0.044715, %v182_v52  ;;  %v186_v6 = vmul.f32 0.5, %v182_v52 }
 0x155   :  { %v187_v56 = vmul.f32 0.044715, %v177_v54  ;;  %v185_v4 = vmul.f32 0.5, %v177_v54 }
 0x156   :  { %v190_v57 = vmul.f32 %v188_v55, %v182_v52 }
 0x157   :  { %v189_v58 = vmul.f32 %v187_v56, %v177_v54 }
 0x158   :  { %v192_v59 = vmul.f32 %v190_v57, %v182_v52 }
 0x159   :  { %v191_v60 = vmul.f32 %v189_v58, %v177_v54 }
 0x15a   :  { %v194_v61 = vadd.f32 %v192_v59, %v182_v52 }
 0x15b   :  { %v193_v62 = vadd.f32 %v191_v60, %v177_v54 }
 0x15c   :  { %v196_v63 = vmul.f32 1.2533141, %v194_v61 }
 0x15d   :  { %v195_v0 = vmul.f32 1.2533141, %v193_v62 }
 0x15e   :  { %502 = vtanh.f32 %v196_v63 }
 0x15f   :  { %504 = vtanh.f32 %v195_v0 }
 0x168   :  { %v503_v1 = vpop.eup %502 }
 0x169   :  { %v505_v2 = vpop.eup %504  ;;  %v200_v3 = vadd.f32 1.0, %v503_v1 }
 0x16a   :  { %v199_v5 = vadd.f32 1.0, %v505_v2 }
 0x16b   :  { %v202_v8 = vmul.f32 %v200_v3, %v186_v6 }
 0x16c   :  { %v201_v7 = vmul.f32 %v199_v5, %v185_v4 }
 0x16e   :  { %427 = vmatprep.mubr.f32.mxu1 %v201_v7 }
 0x16f   :  { %428 = vmatmul.mubr.f32.vlgmr.msra.gmra.mrb[0].mxu1 %v202_v8 }
 0x242   :  { %v429_v10 = vpop.f32.mrb[0].mxu1 }
 0x243   :  { %v298_v11 = vadd.f32 %v429_v10, %v323_v9  ;;  %v292_v12 = vpop.f32.mrb[1].mxu1 }
 0x244   :  { %v293_v13 = vadd.f32 %v323_v9, %v292_v12 }
 0x245   :  { %302 = vst [vmem:[#allocation11 + $0x8] sm:$0xff] %v298_v11 }
 0x246   :  { %301 = vst [vmem:[#allocation11] sm:$0xff] %v293_v13 }
 0x247   :  { %627 = shalt.err (!%p624_p2)
}
 0x248   :  { %s628_s9 = scalar_lea.hbm %s780_s5, 256 }
 0x249   :  { %p629_p3 = scmp.ne.s32.totalorder %s780_s5, %s628_s9  ;;  %p632_p4 = scmp.lt.u32.totalorder %s628_s9, %s780_s5 }
 0x24b   :  { %p634_p5 = pnand %p632_p4, %p629_p3 }
 0x24d   :  { %637 = shalt.err (!%p634_p5)
}
 0x24e   :  { %314 = dma.vmem_to_hbm [thread:$0]  %s309_s3, 256, %s780_s5, [#allocation4], %s648_s30, %s648_s30, %s649_s6  }
 0x24f   :  { %644 = dma.done.wait [#allocation4], 256  }
 0x250   :  { %645 = vsyncadd [#allocation4], 4294967040 }
 0x251   :  { %318 = vsyncpa [#allocation3], 1 }
 0x252   :  { %319 = vsyncpa [#allocation6], 1 }
 0x253   :  { %320 = vsyncpa [#allocation9], 1 }
 0x254   :  { %321 = vsyncpa [#allocation4], 1 }

</bundles_post_ra>
